<compile_context>
chip_gen: v7x
topology: tpu7x:2x2x1
jax: 0.10.0
libtpu: 0.0.40
codegen_flags: <defaults>
</compile_context>

<pallas_src>
import jax
import jax.numpy as jnp
from jax.experimental import pallas as pl
from jax.experimental.pallas import tpu as pltpu


def _round_up(n, m):
    return ((n + m - 1) // m) * m


def _pad2(a, rows, cols):
    pr, pc = rows - a.shape[0], cols - a.shape[1]
    if pr == 0 and pc == 0:
        return a
    return jnp.pad(a, ((0, pr), (0, pc)))


def _vmem_capacity_bytes():
    # Generation-aware VMEM capacity (64 MiB/TC on v7x, 128 MiB on v5e/v6e).
    try:
        return int(pltpu.get_tpu_info().vmem_capacity_bytes)
    except Exception:
        return 64 << 20  # conservative fallback, safe on every generation


def ffn_kernel(x_ref, w1_ref, b1_ref, w2_ref, b2_ref, o_ref, acc_ref):
    k = pl.program_id(1)

    @pl.when(k == 0)
    def _():
        # Fold b2 into the accumulator init (one broadcast per row tile).
        acc_ref[...] = jnp.broadcast_to(
            b2_ref[...].astype(jnp.float32), acc_ref.shape)

    # hidden chunk = relu(x @ W1[:, k-chunk] + b1[k-chunk])  (MXU, f32 acc)
    h = jnp.dot(x_ref[...], w1_ref[...], preferred_element_type=jnp.float32)
    h = jnp.maximum(h + b1_ref[...], 0.0)          # ReLU on the VPU
    # dropout: identity in eval mode

    # accumulate this chunk's contribution: h_chunk @ W2[k-chunk, :]
    acc_ref[...] += jnp.dot(h.astype(w2_ref.dtype), w2_ref[...],
                            preferred_element_type=jnp.float32)

    @pl.when(k == pl.num_programs(1) - 1)
    def _():
        o_ref[...] = acc_ref[...].astype(o_ref.dtype)


def positionwise_feed_forward(x, w1, b1, w2, b2, *,
                              row_tile=512, ff_tile=1024,
                              compute_dtype=None,
                              allow_weight_resident=True):
    """x: (..., d_model). w1: (d_model, d_ff). w2: (d_ff, d_model)."""
    orig_shape = x.shape
    out_dtype = x.dtype
    d_model = orig_shape[-1]
    d_ff = w1.shape[1]

    x2d = x.reshape(-1, d_model)
    n_rows = x2d.shape[0]

    # Optional low-precision MXU path (f32 accumulation kept in-kernel).
    # Prefer passing pre-cast bf16 weights: the astype is only emitted when
    # dtypes actually differ, so casting once outside the hot path avoids the
    # extra full-weight HBM round trip on every call.
    if compute_dtype is not None:
        if x2d.dtype != compute_dtype:
            x2d = x2d.astype(compute_dtype)
        if w1.dtype != compute_dtype:
            w1 = w1.astype(compute_dtype)
        if w2.dtype != compute_dtype:
            w2 = w2.astype(compute_dtype)
    b1 = b1.astype(jnp.float32)
    b2 = b2.astype(jnp.float32)

    ix = jnp.dtype(x2d.dtype).itemsize
    iw = jnp.dtype(w1.dtype).itemsize
    io = jnp.dtype(out_dtype).itemsize

    # Lane-dense feature padding (multiples of 128); zero-padding is exact.
    d_model_p = _round_up(d_model, 128)
    d_ff_full = _round_up(d_ff, 128)

    # Row tiling (sublane aligned).  Guarantee >= 2 row tiles when the row
    # count allows so both v7x TensorCores get work under "parallel".
    sub = 8 if ix >= 4 else 16
    row_tile = max(sub, min(row_tile, _round_up(n_rows, sub)))
    row_tile = _round_up(row_tile, sub)
    if _round_up(n_rows, row_tile) // row_tile < 2:
        half = _round_up(max(row_tile // 2, sub), sub)
        if half < row_tile and _round_up(n_rows, half) // half >= 2:
            row_tile = half

    # ---- VMEM-aware choice of the d_ff (reduction) tiling -------------------
    vmem_cap = _vmem_capacity_bytes()
    budget = max(vmem_cap - (8 << 20), 32 << 20)   # ~8 MiB headroom

    def vmem_need(rt, ft, n_wbuf):
        return (2 * rt * d_model_p * ix            # x tile (double-buffered)
                + n_wbuf * d_model_p * ft * iw     # W1 chunk buffers
                + n_wbuf * ft * d_model_p * iw     # W2 chunk buffers
                + 2 * (ft + d_model_p) * 4         # biases (double-buffered)
                + 2 * rt * d_model_p * io          # out tile
                + rt * d_model_p * 4               # f32 accumulator scratch
                + rt * ft * 4)                     # hidden intermediate h

    resident = (allow_weight_resident
                and vmem_need(row_tile, d_ff_full, 2) <= budget)
    if resident:
        # Weight-resident fast path: single k step -> W1/W2 fetched from HBM
        # exactly once for the whole kernel (index_map constant in k and i).
        ff_tile = d_ff_full
        n_wbuf = 2
    else:
        ff_tile = max(128, min(_round_up(ff_tile, 128), d_ff_full))
        n_wbuf = 3   # triple-buffer the streamed weights (critical DMA path)
        while ff_tile > 128 and vmem_need(row_tile, ff_tile, n_wbuf) > budget:
            ff_tile = max(128, _round_up(ff_tile // 2, 128))
        while row_tile > sub and vmem_need(row_tile, ff_tile, n_wbuf) > budget:
            row_tile = max(sub, _round_up(row_tile // 2, sub))

    n_rows_p = _round_up(n_rows, row_tile)
    d_ff_p = _round_up(d_ff, ff_tile)

    x_p = _pad2(x2d, n_rows_p, d_model_p)
    w1_p = _pad2(w1, d_model_p, d_ff_p)
    w2_p = _pad2(w2, d_ff_p, d_model_p)
    b1_p = _pad2(b1.reshape(1, d_ff), 1, d_ff_p)
    b2_p = _pad2(b2.reshape(1, d_model), 1, d_model_p)

    grid = (n_rows_p // row_tile, d_ff_p // ff_tile)
    num_row_tiles, num_k = grid

    # BlockSpecs.  Streamed weights get a 3-deep pipeline.
    x_spec = pl.BlockSpec((row_tile, d_model_p), lambda i, k: (i, 0))
    b1_spec = pl.BlockSpec((1, ff_tile), lambda i, k: (0, k))
    b2_spec = pl.BlockSpec((1, d_model_p), lambda i, k: (0, 0))
    if num_k > 1:
        w1_spec = pl.BlockSpec((d_model_p, ff_tile), lambda i, k: (0, k),
                               pipeline_mode=pl.Buffered(n_wbuf))
        w2_spec = pl.BlockSpec((ff_tile, d_model_p), lambda i, k: (k, 0),
                               pipeline_mode=pl.Buffered(n_wbuf))
    else:
        w1_spec = pl.BlockSpec((d_model_p, ff_tile), lambda i, k: (0, k))
        w2_spec = pl.BlockSpec((ff_tile, d_model_p), lambda i, k: (k, 0))
    out_spec = pl.BlockSpec((row_tile, d_model_p), lambda i, k: (i, 0))

    vmem_limit = int(min(max(vmem_need(row_tile, ff_tile, n_wbuf) * 1.25
                             + (4 << 20), 16 << 20),
                         budget))

    # Cost estimate reflecting actual weight (re-)streaming.
    weight_passes = 1 if num_k == 1 else num_row_tiles
    flops = 4 * n_rows_p * d_model_p * d_ff_p      # two matmuls, 2 flops/MAC
    bytes_accessed = (x_p.size * ix
                      + weight_passes * (w1_p.size + w2_p.size) * iw
                      + weight_passes * (b1_p.size + b2_p.size) * 4
                      + n_rows_p * d_model_p * io)

    out = pl.pallas_call(
        ffn_kernel,
        out_shape=jax.ShapeDtypeStruct((n_rows_p, d_model_p), out_dtype),
        grid_spec=pltpu.PrefetchScalarGridSpec(
            num_scalar_prefetch=0,
            grid=grid,
            in_specs=[x_spec, w1_spec, b1_spec, w2_spec, b2_spec],
            out_specs=out_spec,
            scratch_shapes=[pltpu.VMEM((row_tile, d_model_p), jnp.float32)],
        ),
        compiler_params=pltpu.CompilerParams(
            dimension_semantics=("parallel", "arbitrary"),
            vmem_limit_bytes=vmem_limit,
        ),
        cost_estimate=pl.CostEstimate(
            flops=int(flops), transcendentals=0,
            bytes_accessed=int(bytes_accessed)),
    )(x_p, w1_p, b1_p, w2_p, b2_p)

    out = out[:n_rows, :d_model]
    return out.reshape(orig_shape)


def _ref_ffn(x, w1, b1, w2, b2):
    # Pure-JAX reference (eval-mode dropout == identity), full f32 precision.
    h = jnp.maximum(
        jnp.dot(x, w1, precision=jax.lax.Precision.HIGHEST) + b1, 0.0)
    return jnp.dot(h, w2, precision=jax.lax.Precision.HIGHEST) + b2


if __name__ == "__main__":
    # Small shapes consistent with the module: (batch, seq, d_model)
    batch, seq, d_model, d_ff = 2, 8, 32, 64

    key = jax.random.PRNGKey(0)
    kx, kw1, kb1, kw2, kb2, kw3, kb3 = jax.random.split(key, 7)

    x = jax.random.normal(kx, (batch, seq, d_model), dtype=jnp.float32)

    # Deterministic PyTorch-Linear-style init: U(-1/sqrt(fan_in), 1/sqrt(fan_in))
    bound1 = 1.0 / (d_model ** 0.5)
    w1 = jax.random.uniform(kw1, (d_model, d_ff), jnp.float32, -bound1, bound1)
    b1 = jax.random.uniform(kb1, (d_ff,), jnp.float32, -bound1, bound1)
    bound2 = 1.0 / (d_ff ** 0.5)
    w2 = jax.random.uniform(kw2, (d_ff, d_model), jnp.float32, -bound2, bound2)
    b2 = jax.random.uniform(kb2, (d_model,), jnp.float32, -bound2, bound2)

    ref = _ref_ffn(x, w1, b1, w2, b2)

    # 1) f32, weight-resident fast path (single k step): exact to tight tol.
    y = positionwise_feed_forward(x, w1, b1, w2, b2)
    y = jax.block_until_ready(y)
    assert jnp.allclose(y, ref, atol=1e-5, rtol=1e-5), "f32 mismatch vs reference"

    # 2) bf16 compute path (MXU-peak on v6e/v7x): looser tolerance from operand
    #    rounding; accumulation stays f32 inside the kernel.
    y_bf16 = positionwise_feed_forward(x, w1, b1, w2, b2,
                                       compute_dtype=jnp.bfloat16)
    y_bf16 = jax.block_until_ready(y_bf16)
    assert jnp.allclose(y_bf16, ref, atol=3e-2, rtol=3e-2), "bf16 mismatch vs reference"

    # 3) Forced weight-streaming configuration (multi k-step accumulator path
    #    with Buffered(3) weight specs) on a wider d_ff to exercise it.
    d_ff_big = 384
    bound3 = 1.0 / (d_ff_big ** 0.5)
    w1b = jax.random.uniform(kw3, (d_model, d_ff_big), jnp.float32, -bound1, bound1)
    b1b = jax.random.uniform(kb3, (d_ff_big,), jnp.float32, -bound1, bound1)
    w2b = jax.random.uniform(kw2, (d_ff_big, d_model), jnp.float32, -bound3, bound3)
    ref_big = _ref_ffn(x, w1b, b1b, w2b, b2)
    y_stream = positionwise_feed_forward(x, w1b, b1b, w2b, b2,
                                         ff_tile=128,
                                         allow_weight_resident=False)
    y_stream = jax.block_until_ready(y_stream)
    assert jnp.allclose(y_stream, ref_big, atol=1e-4, rtol=1e-4), \
        "streaming-path mismatch vs reference"

    print("KERNEL_OK")
</pallas_src>

<mosaic_0001>
module attributes {stable_mosaic.version = 11 : i64} {
  func.func @ffn_kernel(%arg0: i32, %arg1: i32, %arg2: memref<8x128xf32, #tpu.memory_space<vmem>>, %arg3: memref<128x128xf32, #tpu.memory_space<vmem>>, %arg4: memref<1x128xf32, #tpu.memory_space<vmem>>, %arg5: memref<128x128xf32, #tpu.memory_space<vmem>>, %arg6: memref<1x128xf32, #tpu.memory_space<vmem>>, %arg7: memref<8x128xf32, #tpu.memory_space<vmem>>, %arg8: memref<8x128xf32, #tpu.memory_space<vmem>>) attributes {dimension_semantics = [#tpu.dimension_semantics<parallel>, #tpu.dimension_semantics<arbitrary>], iteration_bounds = array<i64: 2, 1>, scalar_prefetch = 0 : i64, scratch_operands = 1 : i64, tpu.core_type = #tpu.core_type<tc>, window_params = [{transform_indices = @transform_0, window_bounds = array<i64: 8, 128>}, {transform_indices = @transform_1, window_bounds = array<i64: 128, 128>}, {transform_indices = @transform_2, window_bounds = array<i64: 1, 128>}, {transform_indices = @transform_3, window_bounds = array<i64: 128, 128>}, {pipeline_mode = #tpu.pipeline_mode<synchronous>, transform_indices = @transform_4, window_bounds = array<i64: 1, 128>}, {transform_indices = @transform_5, window_bounds = array<i64: 8, 128>}]} {
    %c0_i32 = arith.constant 0 : i32
    %0 = arith.cmpi eq, %arg1, %c0_i32 : i32
    %1 = arith.extui %0 : i1 to i32
    %c0_i32_0 = arith.constant 0 : i32
    %2 = arith.cmpi ne, %1, %c0_i32_0 : i32
    scf.if %2 {
      %c0_16 = arith.constant 0 : index
      %c0_17 = arith.constant 0 : index
      %19 = vector.load %arg6[%c0_16, %c0_17] : memref<1x128xf32, #tpu.memory_space<vmem>>, vector<1x128xf32>
      %20 = vector.shape_cast %19 : vector<1x128xf32> to vector<1x128xf32>
      %21 = vector.broadcast %20 : vector<1x128xf32> to vector<8x128xf32>
      %c0_18 = arith.constant 0 : index
      %c0_19 = arith.constant 0 : index
      %22 = vector.load %arg8[%c0_18, %c0_19] : memref<8x128xf32, #tpu.memory_space<vmem>>, vector<8x128xf32>
      tpu.vector_store %arg8[%c0_18, %c0_19], %21 {strides = array<i32>} : memref<8x128xf32, #tpu.memory_space<vmem>>, vector<8x128xf32>,
    } else {
    }
    %c0 = arith.constant 0 : index
    %c0_1 = arith.constant 0 : index
    %3 = vector.load %arg2[%c0, %c0_1] : memref<8x128xf32, #tpu.memory_space<vmem>>, vector<8x128xf32>
    %c0_2 = arith.constant 0 : index
    %c0_3 = arith.constant 0 : index
    %4 = vector.load %arg3[%c0_2, %c0_3] : memref<128x128xf32, #tpu.memory_space<vmem>>, vector<128x128xf32>
    %cst = arith.constant dense<0.000000e+00> : vector<8x128xf32>
    %5 = tpu.matmul %3, %4, %cst {dimension_numbers = #tpu.dot_dimension_numbers<[1], [0], [0], [1], [0, 0, 1, 1], [], []>} : vector<8x128xf32>, vector<128x128xf32>, vector<8x128xf32> -> vector<8x128xf32>
    %c0_4 = arith.constant 0 : index
    %c0_5 = arith.constant 0 : index
    %6 = vector.load %arg4[%c0_4, %c0_5] : memref<1x128xf32, #tpu.memory_space<vmem>>, vector<1x128xf32>
    %7 = vector.broadcast %6 : vector<1x128xf32> to vector<8x128xf32>
    %8 = arith.addf %5, %7 : vector<8x128xf32>
    %cst_6 = arith.constant 0.000000e+00 : f32
    %9 = vector.broadcast %cst_6 : f32 to vector<8x128xf32>
    %10 = arith.maximumf %8, %9 : vector<8x128xf32>
    %c0_7 = arith.constant 0 : index
    %c0_8 = arith.constant 0 : index
    %11 = vector.load %arg8[%c0_7, %c0_8] : memref<8x128xf32, #tpu.memory_space<vmem>>, vector<8x128xf32>
    %c0_9 = arith.constant 0 : index
    %c0_10 = arith.constant 0 : index
    %12 = vector.load %arg5[%c0_9, %c0_10] : memref<128x128xf32, #tpu.memory_space<vmem>>, vector<128x128xf32>
    %cst_11 = arith.constant dense<0.000000e+00> : vector<8x128xf32>
    %13 = tpu.matmul %10, %12, %cst_11 {dimension_numbers = #tpu.dot_dimension_numbers<[1], [0], [0], [1], [0, 0, 1, 1], [], []>} : vector<8x128xf32>, vector<128x128xf32>, vector<8x128xf32> -> vector<8x128xf32>
    %14 = arith.addf %11, %13 : vector<8x128xf32>
    %c0_12 = arith.constant 0 : index
    %c0_13 = arith.constant 0 : index
    %15 = vector.load %arg8[%c0_12, %c0_13] : memref<8x128xf32, #tpu.memory_space<vmem>>, vector<8x128xf32>
    tpu.vector_store %arg8[%c0_12, %c0_13], %14 {strides = array<i32>} : memref<8x128xf32, #tpu.memory_space<vmem>>, vector<8x128xf32>,
    %c0_i32_14 = arith.constant 0 : i32
    %16 = arith.cmpi eq, %arg1, %c0_i32_14 : i32
    %17 = arith.extui %16 : i1 to i32
    %c0_i32_15 = arith.constant 0 : i32
    %18 = arith.cmpi ne, %17, %c0_i32_15 : i32
    scf.if %18 {
      %c0_16 = arith.constant 0 : index
      %c0_17 = arith.constant 0 : index
      %19 = vector.load %arg8[%c0_16, %c0_17] : memref<8x128xf32, #tpu.memory_space<vmem>>, vector<8x128xf32>
      %c0_18 = arith.constant 0 : index
      %c0_19 = arith.constant 0 : index
      %20 = vector.load %arg7[%c0_18, %c0_19] : memref<8x128xf32, #tpu.memory_space<vmem>>, vector<8x128xf32>
      tpu.vector_store %arg7[%c0_18, %c0_19], %19 {strides = array<i32>} : memref<8x128xf32, #tpu.memory_space<vmem>>, vector<8x128xf32>,
    } else {
    }
    return
  }
  func.func @transform_0(%arg0: i32, %arg1: i32) -> (i32, i32) {
    %c0_i32 = arith.constant 0 : i32
    %c0_i32_0 = arith.constant 0 : i32
    return %arg0, %c0_i32 : i32, i32
  }
  func.func @transform_1(%arg0: i32, %arg1: i32) -> (i32, i32) {
    %c0_i32 = arith.constant 0 : i32
    %c0_i32_0 = arith.constant 0 : i32
    return %c0_i32, %arg1 : i32, i32
  }
  func.func @transform_2(%arg0: i32, %arg1: i32) -> (i32, i32) {
    %c0_i32 = arith.constant 0 : i32
    %c0_i32_0 = arith.constant 0 : i32
    return %c0_i32, %arg1 : i32, i32
  }
  func.func @transform_3(%arg0: i32, %arg1: i32) -> (i32, i32) {
    %c0_i32 = arith.constant 0 : i32
    %c0_i32_0 = arith.constant 0 : i32
    return %arg1, %c0_i32 : i32, i32
  }
  func.func @transform_4(%arg0: i32, %arg1: i32) -> (i32, i32) {
    %c0_i32 = arith.constant 0 : i32
    %c0_i32_0 = arith.constant 0 : i32
    %c0_i32_1 = arith.constant 0 : i32
    return %c0_i32, %c0_i32_0 : i32, i32
  }
  func.func @transform_5(%arg0: i32, %arg1: i32) -> (i32, i32) {
    %c0_i32 = arith.constant 0 : i32
    %c0_i32_0 = arith.constant 0 : i32
    return %arg0, %c0_i32 : i32, i32
  }
}

</mosaic_0001>

<bundles_post_ra>
// kernel: tpu_custom_call.1
= control target key start
LH: loop header
LB: loop body
LE: loop exit
PB: predicated region body
PF: predicated region fallthrough
CT: control target
= control target key end

     0   :  { %10 = vsyncpa [#allocation4], 0  ;;  %s1391_s0 = inlined_call_operand.hbm [shape: f32[16,128], index: 0, kind: input, shape index: {}]   ;;  %s1392_s1 = inlined_call_operand.hbm [shape: f32[128,128], index: 1, kind: input, shape index: {}]   ;;  %s1393_s2 = inlined_call_operand.vmem [shape: f32[1,128], index: 2, kind: input, shape index: {}]   ;;  %s1394_s3 = inlined_call_operand.hbm [shape: f32[128,128], index: 3, kind: input, shape index: {}]   ;;  %s1395_s4 = inlined_call_operand.vmem [shape: f32[1,128], index: 4, kind: input, shape index: {}]   ;;  %s1396_s5 = inlined_call_operand.hbm [shape: f32[16,128], index: 5, kind: output, shape index: {}]  }
   0x1   :  { %12 = vsyncpa [#allocation4 + $0x1], 0 }
   0x2   :  { %13 = vsyncpa [#allocation7], 0 }
   0x3   :  { %14 = vsyncpa [#allocation5], 0 }
   0x4   :  { %16 = vsyncpa [#allocation5 + $0x1], 0  ;;  %s1112_s18 = smov 0   ;;  %s1114_s19 = smov 0  }
   0x5   :  { %s1116_s20 = smov 0   ;;  %s1118_s21 = smov 0  }
   0x6   :  { %s1120_s22 = smov 0   ;;  %s1122_s23 = smov 0  }
   0x7 LB: > { %s639_s24 = sadd.s32 4294967295, %s1071_s23   ;;  %s640_s25 = sadd.s32 4294967294, %s1071_s23   ;;  %s1071_s23 = sphi %s1122_s23, %s22_s23   ;;  %s1067_s22 = sphi %s1120_s22, %s1418_s22   ;;  %s1063_s21 = sphi %s1118_s21, %s1417_s21   ;;  %s1059_s20 = sphi %s1116_s20, %s1416_s20   ;;  %s1055_s19 = sphi %s1114_s19, %s1415_s19   ;;  %s1051_s18 = sphi %s1112_s18, %s1414_s18  }
   0x8   : > { %p54_p0 = scmp.ne.s32.totalorder %s1055_s19, %s1051_s18  ;;  %p1146_p1 = scmp.eq.s32.totalorder %s639_s24, 0 }
   0x9   : > { %p1150_p2 = scmp.eq.s32.totalorder %s639_s24, 1  ;;  %p183_p3 = scmp.eq.s32.totalorder %s640_s25, 1 }
   0xa   : > { %s1401_s26 = scalar_select %p1146_p1, 1, 0 }
   0xb   : > { %p1156_p4 = por %p1146_p1, %p54_p0  ;;  %p641_p5 = scmp.ge.s32.totalorder %s1071_s23, 1 }
   0xc   : > { %p1161_p6 = por %p183_p3, %p54_p0  ;;  %p190_p7 = scmp.lt.s32.totalorder %s1071_s23, 3 }
   0xd   : > { %s1403_s28 = scalar_select %p1156_p4, 1, 0 }
   0xe   : > { %s1404_s29 = scalar_select %p1161_p6, 1, 0 }
   0xf   : > { %p1166_p8 = pnand %p641_p5, %p190_p7  ;;  %s1073_s6 = smov [#allocation6]  }
  0x10   : > { %s204_s7 = sshll.u32 %s1073_s6, 4  ;;  %s1074_s9 = smov [#allocation8]   ;;  %s1170_s7 = int_to_ptr.vmem [resolvable:$true] %s204_s7 }
  0x11   : > { %p823_p9 = pneg %p1166_p8  ;;  %s226_s10 = sshll.u32 %s1074_s9, 4  ;;  %s1181_s10 = int_to_ptr.vmem [resolvable:$true] %s226_s10 }
  0x12   : > { %s899_s13 = scalar_lea.hbm %s1392_s1, 2048 }
  0x13   : > { %p1177_p11 = pnand %p823_p9, %p1146_p1  ;;  %p900_p12 = scmp.ne.s32.totalorder %s1392_s1, %s899_s13 }
  0x14   : > { %p906_p5 = scmp.lt.u32.totalorder %s899_s13, %s1392_s1 }
  0x15   : > { %p901_p13 = pneg %p1177_p11 }
  0x17   : > { %p902_p0 = pnand %p901_p13, %p900_p12 }
  0x19   : > { %p903_p3 = pneg %p902_p0 }
  0x1b   : > { %p908_p7 = pnand %p906_p5, %p903_p3 }
  0x1d   : > { %911 = shalt.err (!%p908_p7)
}
  0x1e   : > { %s912_s24 = scalar_lea.vmem %s1170_s7, 2048  ;;  %p920_p1 = scmp.lt.s32.totalorder %s1170_s7, %s1170_s7 }
  0x1f   : > { %p913_p9 = scmp.ne.s32.totalorder %s1170_s7, %s912_s24  ;;  %p921_p12 = scmp.lt.s32.totalorder %s912_s24, %s912_s24 }
  0x21   : > { %p915_p10 = pnand %p913_p9, %p901_p13  ;;  %p922_p0 = por %p921_p12, %p920_p1 }
  0x23   : > { %p916_p6 = pneg %p915_p10 }
  0x25   : > { %p923_p4 = pnand %p922_p0, %p916_p6 }
  0x27   : > { %926 = shalt.err (!%p923_p4)
}
  0x28   : > { %s1075_s25 = smov 128   ;;  %s1076_s6 = smov 8  }
  0x29   : > { %826 = dma.hbm_to_vmem [thread:$0]  (!%p1177_p11), %s1392_s1, 2048, %s1170_s7, [#allocation7], %s1075_s25, %s1075_s25, %s1076_s6  }
  0x2a   : > { %s927_s14 = scalar_lea.hbm %s1394_s3, 2048 }
  0x2b   : > { %p928_p1 = scmp.ne.s32.totalorder %s1394_s3, %s927_s14  ;;  %p934_p10 = scmp.lt.u32.totalorder %s927_s14, %s1394_s3 }
  0x2d   : > { %p930_p4 = pnand %p928_p1, %p901_p13 }
  0x2f   : > { %p931_p6 = pneg %p930_p4 }
  0x31   : > { %p936_p3 = pnand %p934_p10, %p931_p6 }
  0x33   : > { %939 = shalt.err (!%p936_p3)
}
  0x34   : > { %s940_s7 = scalar_lea.vmem %s1181_s10, 2048  ;;  %p948_p12 = scmp.lt.s32.totalorder %s1181_s10, %s1181_s10 }
  0x35   : > { %p941_p5 = scmp.ne.s32.totalorder %s1181_s10, %s940_s7  ;;  %p949_p0 = scmp.lt.s32.totalorder %s940_s7, %s940_s7 }
  0x37   : > { %p943_p7 = pnand %p941_p5, %p901_p13  ;;  %p950_p1 = por %p949_p0, %p948_p12 }
  0x39   : > { %p944_p9 = pneg %p943_p7 }
  0x3b   : > { %p951_p4 = pnand %p950_p1, %p944_p9 }
  0x3d   : > { %954 = shalt.err (!%p951_p4)
}
  0x3e   : > { %829 = dma.hbm_to_vmem [thread:$0]  (!%p1177_p11), %s1394_s3, 2048, %s1181_s10, [#allocation7], %s1075_s25, %s1075_s25, %s1076_s6  }
  0x3f   : > { %s34_s12 = sadd.s32 1, %s1067_s22  ;;  %s41_s13 = sadd.s32 1, %s1059_s20 }
  0x40   : > { %p36_p13 = scmp.ge.s32.totalorder %s34_s12, 2  ;;  %p48_p6 = scmp.ne.s32.totalorder %s1059_s20, %s1055_s19 }
  0x41   : > { %p49_p10 = scmp.eq.s32.totalorder %s1071_s23, 0  ;;  %p840_p3 = scmp.lt.s32.totalorder %s1071_s23, 2 }
  0x42   : > { %s1420_s12 = smov (%p36_p13, %s34_s12), 0  ;;  %p1245_p7 = por %p1150_p2, %p48_p6 }
  0x43   : > { %p50_p5 = por %p49_p10, %p48_p6  ;;  %s38_s14 = ssub.s32 %s1067_s22, %s1420_s12 }
  0x44   : > { %s1407_s8 = scalar_select %p1245_p7, 1, 0 }
  0x45   : > { %s243_s15 = sand.u32 1, %s1059_s20   ;;  %p39_p9 = scmp.eq.s32.totalorder %s38_s14, 0 }
  0x46   : > { %s646_s10 = sshll.u32 %s243_s15, 3  ;;  %s647_s25 = sshll.u32 %s1067_s22, 7 }
  0x47   : > { %s1254_s6 = scalar_select %p39_p9, %s1059_s20, %s41_s13  }
  0x48   : > { %s1259_s24 = scalar_lea.hbm %s1391_s0, %s647_s25  ;;  %s247_s27 = scalar_lea.vmem [#allocation3], %s646_s10 }
  0x49   : > { %s254_s7 = sshll.u32 %s247_s27, 4  ;;  %p1263_p2 = pnand %p840_p3, %p50_p5  ;;  %s1267_s7 = int_to_ptr.vmem [resolvable:$true] %s254_s7 }
  0x4a   : > { %s244_s11 = scalar_lea.sflag [#allocation4], %s243_s15  ;;  %s955_s13 = scalar_lea.hbm %s1259_s24, 128 }
  0x4b   : > { %p956_p11 = scmp.ne.s32.totalorder %s1259_s24, %s955_s13  ;;  %p957_p12 = pneg %p1263_p2 }
  0x4c   : > { %s960_s25 = scalar_lea.hbm %s1391_s0, 256  ;;  %p961_p4 = scmp.lt.u32.totalorder %s1259_s24, %s1391_s0 }
  0x4d   : > { %p958_p0 = pnand %p957_p12, %p956_p11  ;;  %p962_p13 = scmp.lt.u32.totalorder %s960_s25, %s955_s13 }
  0x4e   : > { %p964_p10 = scmp.lt.u32.totalorder %s955_s13, %s1259_s24 }
  0x4f   : > { %p959_p1 = pneg %p958_p0  ;;  %p963_p6 = por %p962_p13, %p961_p4 }
  0x51   : > { %p965_p3 = por %p964_p10, %p963_p6 }
  0x53   : > { %p966_p5 = pnand %p965_p3, %p959_p1 }
  0x55   : > { %969 = shalt.err (!%p966_p5)
}
  0x56   : > { %s970_s15 = scalar_lea.vmem %s1267_s7, 128  ;;  %s1077_s27 = smov [#allocation3]  }
  0x57   : > { %p971_p9 = scmp.ne.s32.totalorder %s1267_s7, %s970_s15  ;;  %s975_s14 = sshll.u32 %s1077_s27, 4  ;;  %s976_s14 = int_to_ptr.vmem [resolvable:$false] %s975_s14 }
  0x58   : > { %s977_s10 = scalar_lea.vmem %s976_s14, 256  ;;  %p978_p7 = scmp.lt.s32.totalorder %s1267_s7, %s976_s14 }
  0x59   : > { %p973_p11 = pnand %p971_p9, %p957_p12  ;;  %p979_p4 = scmp.lt.s32.totalorder %s977_s10, %s970_s15 }
  0x5b   : > { %p974_p0 = pneg %p973_p11  ;;  %p980_p13 = por %p979_p4, %p978_p7 }
  0x5d   : > { %p981_p6 = pnand %p980_p13, %p974_p0 }
  0x5f   : > { %984 = shalt.err (!%p981_p6)
}
  0x60   : > { %833 = dma.hbm_to_vmem [thread:$0]  (!%p1263_p2), %s1259_s24, 128, %s1267_s7, %s244_s11  }
  0x61   : > { %263 = sbr.rel (%p1166_p8) target bundleno = 587 (0x24b), region = 40  ;;  %s1297_s13 = sand.u32 (!%p1166_p8), 1, %s1055_s19  }
  0x62   : > { %s649_s25 = sshll.u32 (!%p1166_p8), %s1297_s13, 3  ;;  %s266_s16 = scalar_lea.sflag (!%p1166_p8), [#allocation4], %s1297_s13 }
  0x63   : > { %s1303_s17 = scalar_lea.vmem (!%p1166_p8), [#allocation3], %s649_s25  ;;  %p1409_p7 = scmp.ne.s32.totalorder (!%p1166_p8), %s1403_s28, 0 }
  0x68   : > { %1038 = dma.done.wait (%p1409_p7), %s266_s16, 128  }
  0x69   : > { %1040 = vsyncadd (%p1409_p7), %s266_s16, 4294967168  ;;  %p1410_p2 = scmp.ne.s32.totalorder %s1401_s26, 0 }
  0x6b   : > { %1042 = dma.done.wait (%p1410_p2), [#allocation7], 4096  }
  0x6c   : > { %1044 = vsyncadd (%p1410_p2), [#allocation7], 4294963200  ;;  %v1078_v0 = vmov 0.0|0.0   ;;  %vm1079_vm0 = vmmov 0   ;;  %v1080_v1 = vmov 0.0   ;;  %v324_v2 = vld [vmem:[#allocation6] sm:$0xff] }
  0x6d   : > { %763 = vmatprep.subr.bf16.mxu0 %v1078_v0  ;;  %725 = vmatprep.mubr.msk.f32.mxu0 %vm1079_vm0, %v1080_v1  ;;  %v325_v3 = vld [vmem:[#allocation6 + $0x8] sm:$0xff]  ;;  %v326_v4 = vld [vmem:[#allocation6 + $0x10] sm:$0xff]  ;;  %v327_v6 = vld [vmem:[#allocation6 + $0x18] sm:$0xff]  ;;  %s656_s7 = sshll.u32 %s1063_s21, 7  ;;  %s306_s9 = scalar_lea.vmem [#allocation9], %s649_s25 }
  0x6e   : > { %787 = vmatprep.subr.bf16.mxu1 %v1078_v0  ;;  %760 = vmatprep.mubr.msk.f32.mxu1 %vm1079_vm0, %v1080_v1  ;;  %v764_v5 = vpack.c.bf16 %v325_v3, %v324_v2  ;;  %v767_v7 = vpack.c.bf16 %v327_v6, %v326_v4  ;;  %v328_v8 = vld [vmem:[#allocation6 + $0x20] sm:$0xff]  ;;  %v329_v9 = vld [vmem:[#allocation6 + $0x28] sm:$0xff]  ;;  %v421_v12 = vld [vmem:[#allocation8 + $0x10] sm:$0xff]  ;;  %s526_s11 = sshll.u32 %s306_s9, 4  ;;  %s1342_s14 = scalar_lea.hbm %s1396_s5, %s656_s7  ;;  %s1344_s11 = int_to_ptr.vmem [resolvable:$true] %s526_s11 }
  0x6f   : > { %v419_v10 = vld [vmem:[#allocation8] sm:$0xff]  ;;  %v420_v11 = vld [vmem:[#allocation8 + $0x8] sm:$0xff]  ;;  %v422_v13 = vld [vmem:[#allocation8 + $0x18] sm:$0xff]  ;;  %v770_v14 = vpack.c.bf16 %v329_v9, %v328_v8  ;;  %s513_s10 = scalar_lea.sflag [#allocation5], %s1297_s13  ;;  %s985_s16 = scalar_lea.vmem %s1344_s11, 128 }
  0x70   : > { %765 = vmatpush3.bf16.msra.mxu0 %v764_v5  ;;  %v788_v15 = vpack.c.bf16 %v420_v11, %v419_v10  ;;  %v330_v16 = vld [vmem:[#allocation6 + $0x30] sm:$0xff]  ;;  %v331_v17 = vld [vmem:[#allocation6 + $0x38] sm:$0xff]  ;;  %v791_v18 = vpack.c.bf16 %v422_v13, %v421_v12  ;;  %v423_v19 = vld [vmem:[#allocation8 + $0x20] sm:$0xff]  ;;  %p986_p8 = scmp.ne.s32.totalorder %s1344_s11, %s985_s16  ;;  %p1411_p12 = scmp.ne.s32.totalorder %s1407_s8, 0 }
  0x71   : > { %766 = vmatprep.subr.bf16.mxu0 %v1078_v0  ;;  %v424_v20 = vld [vmem:[#allocation8 + $0x28] sm:$0xff]  ;;  %v773_v21 = vpack.c.bf16 %v331_v17, %v330_v16  ;;  %v332_v22 = vld [vmem:[#allocation6 + $0x40] sm:$0xff]  ;;  %v425_v25 = vld [vmem:[#allocation8 + $0x30] sm:$0xff]  ;;  %s1081_s21 = smov [#allocation9]  }
  0x72   : > { %789 = vmatpush3.bf16.msra.mxu1 %v788_v15  ;;  %v333_v23 = vld [vmem:[#allocation6 + $0x48] sm:$0xff]  ;;  %v794_v24 = vpack.c.bf16 %v424_v20, %v423_v19  ;;  %v426_v26 = vld [vmem:[#allocation8 + $0x38] sm:$0xff]  ;;  %v334_v28 = vld [vmem:[#allocation6 + $0x50] sm:$0xff]  ;;  %p987_p1 = pnand %p986_p8, %p1411_p12  ;;  %s989_s25 = sshll.u32 %s1081_s21, 4  ;;  %s990_s25 = int_to_ptr.vmem [resolvable:$false] %s989_s25 }
  0x73   : > { %790 = vmatprep.subr.bf16.mxu1 %v1078_v0  ;;  %v776_v27 = vpack.c.bf16 %v333_v23, %v332_v22  ;;  %v335_v29 = vld [vmem:[#allocation6 + $0x58] sm:$0xff]  ;;  %v797_v30 = vpack.c.bf16 %v426_v26, %v425_v25  ;;  %v427_v31 = vld [vmem:[#allocation8 + $0x40] sm:$0xff]  ;;  %v428_v32 = vld [vmem:[#allocation8 + $0x48] sm:$0xff]  ;;  %p992_p3 = scmp.lt.s32.totalorder %s1344_s11, %s990_s25 }
  0x74   : > { %768 = vmatpush3.bf16.msra.mxu0 %v767_v7  ;;  %v779_v33 = vpack.c.bf16 %v335_v29, %v334_v28  ;;  %v336_v34 = vld [vmem:[#allocation6 + $0x60] sm:$0xff]  ;;  %v337_v35 = vld [vmem:[#allocation6 + $0x68] sm:$0xff]  ;;  %v800_v36 = vpack.c.bf16 %v428_v32, %v427_v31  ;;  %v429_v37 = vld [vmem:[#allocation8 + $0x50] sm:$0xff]  ;;  %p988_p10 = pneg %p987_p1 }
  0x75   : > { %769 = vmatprep.subr.bf16.mxu0 %v1078_v0  ;;  %v430_v38 = vld [vmem:[#allocation8 + $0x58] sm:$0xff]  ;;  %v782_v39 = vpack.c.bf16 %v337_v35, %v336_v34  ;;  %v338_v40 = vld [vmem:[#allocation6 + $0x70] sm:$0xff]  ;;  %v431_v43 = vld [vmem:[#allocation8 + $0x60] sm:$0xff] }
  0x76   : > { %792 = vmatpush3.bf16.msra.mxu1 %v791_v18  ;;  %v339_v41 = vld [vmem:[#allocation6 + $0x78] sm:$0xff]  ;;  %v803_v42 = vpack.c.bf16 %v430_v38, %v429_v37  ;;  %v432_v44 = vld [vmem:[#allocation8 + $0x68] sm:$0xff]  ;;  %v433_v48 = vld [vmem:[#allocation8 + $0x70] sm:$0xff] }
  0x77   : > { %793 = vmatprep.subr.bf16.mxu1 %v1078_v0  ;;  %v785_v45 = vpack.c.bf16 %v339_v41, %v338_v40  ;;  %v806_v46 = vpack.c.bf16 %v432_v44, %v431_v43  ;;  %v323_v47 = vld [vmem:[%s1303_s17] sm:$0xff]  ;;  %s991_s17 = scalar_lea.vmem %s990_s25, 256 }
  0x78   : > { %771 = vmatpush3.bf16.msra.mxu0 %v770_v14  ;;  %v434_v49 = vld [vmem:[#allocation8 + $0x78] sm:$0xff]  ;;  %v654_v51 = vld [vmem:[%s1393_s2] ss:$0 sm:$0xff]  ;;  %p993_p5 = scmp.lt.s32.totalorder %s991_s17, %s985_s16 }
  0x79   : > { %772 = vmatprep.subr.bf16.mxu0 %v1078_v0  ;;  %v809_v50 = vpack.c.bf16 %v434_v49, %v433_v48  ;;  %v653_v56 = vld [vmem:[%s1395_s4] ss:$0 sm:$0xff] }
  0x7a   : > { %795 = vmatpush3.bf16.msra.mxu1 %v794_v24  ;;  %p994_p9 = por %p993_p5, %p992_p3 }
  0x7b   : > { %796 = vmatprep.subr.bf16.mxu1 %v1078_v0 }
  0x7c   : > { %774 = vmatpush3.bf16.msra.mxu0 %v773_v21  ;;  %p995_p11 = pnand %p994_p9, %p988_p10 }
  0x7d   : > { %775 = vmatprep.subr.bf16.mxu0 %v1078_v0 }
  0x7e   : > { %798 = vmatpush3.bf16.msra.mxu1 %v797_v30 }
  0x7f   : > { %799 = vmatprep.subr.bf16.mxu1 %v1078_v0 }
  0x80   : > { %777 = vmatpush3.bf16.msra.mxu0 %v776_v27 }
  0x81   : > { %778 = vmatprep.subr.bf16.mxu0 %v1078_v0 }
  0x82   : > { %801 = vmatpush3.bf16.msra.mxu1 %v800_v36 }
  0x83   : > { %802 = vmatprep.subr.bf16.mxu1 %v1078_v0 }
  0x84   : > { %780 = vmatpush3.bf16.msra.mxu0 %v779_v33 }
  0x85   : > { %781 = vmatprep.subr.bf16.mxu0 %v1078_v0 }
  0x86   : > { %804 = vmatpush3.bf16.msra.mxu1 %v803_v42 }
  0x87   : > { %805 = vmatprep.subr.bf16.mxu1 %v1078_v0 }
  0x88   : > { %783 = vmatpush3.bf16.msra.mxu0 %v782_v39 }
  0x89   : > { %784 = vmatprep.subr.bf16.mxu0 %v1078_v0 }
  0x8a   : > { %807 = vmatpush3.bf16.msra.mxu1 %v806_v46 }
  0x8b   : > { %808 = vmatprep.subr.bf16.mxu1 %v1078_v0 }
  0x8c   : > { %786 = vmatpush3.bf16.msra.mxu0 %v785_v45 }
  0x8e   : > { %810 = vmatpush3.bf16.msra.mxu1 %v809_v50 }
  0x8f   : > { %726 = vmatmul.mubr.f32.vlgmr.msra.gmra.mrb[0].mxu0 %v323_v47 }
 0x162   : > { %v413_v52 = vpop.f32.mrb[0].mxu0 }
 0x163   : > { %v414_v53 = vadd.f32 %v654_v51, %v413_v52  ;;  %v727_v54 = vpop.f32.mrb[1].mxu0 }
 0x165   : > { %v417_v55 = vmax.f32 %v414_v53, 0.0 }
 0x167   : > { %761 = vmatmul.mubr.f32.vlgmr.msra.gmra.mrb[0].mxu1 %v417_v55 }
 0x23a   : > { %v501_v57 = vpop.f32.mrb[0].mxu1 }
 0x23b   : > { %v505_v58 = vadd.f32 %v653_v56, %v501_v57  ;;  %v762_v59 = vpop.f32.mrb[1].mxu1 }
 0x23d   : > { %511 = vst [vmem:[%s306_s9] sm:$0xff] %v505_v58 }
 0x23e   : > { %998 = shalt.err (!%p995_p11)
}
 0x23f   : > { %s999_s13 = scalar_lea.hbm %s1342_s14, 128  ;;  %s1003_s30 = scalar_lea.hbm %s1396_s5, 256 }
 0x240   : > { %p1000_p0 = scmp.ne.s32.totalorder %s1342_s14, %s999_s13  ;;  %p1004_p6 = scmp.lt.u32.totalorder %s1342_s14, %s1396_s5 }
 0x241   : > { %p1005_p7 = scmp.lt.u32.totalorder %s1003_s30, %s999_s13  ;;  %p1007_p8 = scmp.lt.u32.totalorder %s999_s13, %s1342_s14 }
 0x242   : > { %p1001_p4 = pnand %p1000_p0, %p1411_p12 }
 0x243   : > { %p1006_p2 = por %p1005_p7, %p1004_p6 }
 0x244   : > { %p1002_p13 = pneg %p1001_p4 }
 0x245   : > { %p1008_p1 = por %p1007_p8, %p1006_p2 }
 0x247   : > { %p1009_p10 = pnand %p1008_p1, %p1002_p13 }
 0x249   : > { %1012 = shalt.err (!%p1009_p10)
}
 0x24a   : > { %821 = dma.vmem_to_hbm [thread:$0]  (%p1411_p12), %s1344_s11, 128, %s1342_s14, %s513_s10  }
 0x24b PF: > { %s538_s9 = sand.u32 1, %s1051_s18   ;;  %p1412_p3 = scmp.ne.s32.totalorder %s1404_s29, 0 }
 0x24c   : > { %p1413_p5 = scmp.ge.s32.totalorder %s1071_s23, 2  ;;  %s539_s15 = scalar_lea.sflag [#allocation5], %s538_s9 }
 0x24e   : > { %p835_p9 = pnand %p1413_p5, %p1412_p3 }
 0x250   : > { %1046 = dma.done.wait (!%p835_p9), %s539_s15, 128  }
 0x251   : > { %1048 = vsyncadd (!%p835_p9), %s539_s15, 4294967168  ;;  %s22_s23 = sadd.s32 1, %s1071_s23   ;;  %s1414_s18 = smov %s1055_s19 }
 0x252   : > { %p19_p11 = scmp.ge.s32.totalorder %s22_s23, 4   ;;  %s1415_s19 = smov %s1059_s20 }
 0x253   : > { %s1416_s20 = smov %s1254_s6  ;;  %s1417_s21 = smov %s1067_s22 }
 0x254   : > { %s1418_s22 = smov %s1420_s12  ;;  %21 = sbr.rel (!%p19_p11) target bundleno = 7 (0x7), region = 106 }
 0x25b   :  { %544 = vsyncpa [#allocation4], 1 }
 0x25c   :  { %546 = vsyncpa [#allocation4 + $0x1], 1 }
 0x25d   :  { %547 = vsyncpa [#allocation7], 1 }
 0x25e   :  { %548 = vsyncpa [#allocation5], 1 }
 0x25f   :  { %550 = vsyncpa [#allocation5 + $0x1], 1 }

</bundles_post_ra>
